<compile_context>
chip_gen: v5e
topology: v5e:2x2
jax: 0.10.0
libtpu: 0.0.40
codegen_flags: <defaults>
</compile_context>

<pallas_src>
import functools

import jax
import jax.numpy as jnp
from jax import lax
from jax.experimental import pallas as pl
from jax.experimental.pallas import tpu as pltpu


def _round_up(n, m):
    return ((n + m - 1) // m) * m


def _tpu_vmem_capacity():
    # Generation-aware VMEM cap (v5e/v6e: 128 MiB, v7x: 64 MiB per TC).
    try:
        info = pltpu.get_tpu_info()
        cap = int(getattr(info, "vmem_capacity_bytes", 0))
        if cap > 0:
            return cap
    except Exception:
        pass
    return 64 << 20  # conservative fallback (v7x per-TensorCore VMEM)


def _vmem_tile_bytes(rows, cols, itemsize):
    # VMEM buffers pad to (8, 128) native tiles; the 15% headroom below covers
    # the finer sublane packing of sub-32-bit dtypes.
    return _round_up(max(rows, 1), 8) * _round_up(max(cols, 1), 128) * itemsize


def _vmem_estimate(tm, D, H1, H2, x_isz, w_isz):
    x_bufs = 3 * _vmem_tile_bytes(tm, D, x_isz)          # up to Buffered(3)
    out_bufs = 2 * _vmem_tile_bytes(1, tm, 4)            # double-buffered out
    weights = (_vmem_tile_bytes(D, H1, w_isz) + _vmem_tile_bytes(1, H1, w_isz)
               + _vmem_tile_bytes(H1, H2, w_isz) + _vmem_tile_bytes(1, H2, w_isz)
               + _vmem_tile_bytes(1, H2, 4))
    temps = (_vmem_tile_bytes(tm, D, w_isz)              # x cast to compute dtype
             + _vmem_tile_bytes(tm, H1, 4)               # f32 h1
             + _vmem_tile_bytes(tm, H2, 4))              # f32 h2
    return int((x_bufs + out_bufs + weights + temps) * 1.15)


def _pick_row_tile(M, D, H1, H2, x_isz, w_isz, vmem_budget):
    # ~2 MiB of streamed x per grid step amortizes the fixed per-step cost.
    tm = max(256, (2 << 20) // max(D * x_isz, 1))
    tm = _round_up(tm, 256)
    # Keep >= 2 grid steps when M allows so the "parallel" axis feeds both
    # v7x TensorCores (no effect on single-TC v5e/v6e).
    tm = min(tm, _round_up(pl.cdiv(M, 2), 16))
    if tm >= M:
        return M  # single full block (block shape == array dims is always legal)
    tm = max(16, (tm // 16) * 16)
    while tm > 16 and _vmem_estimate(tm, D, H1, H2, x_isz, w_isz) > vmem_budget:
        tm = max(16, ((tm // 2) // 16) * 16)
    return tm


def _mlp_kernel(x_ref, w1_ref, b1_ref, w2_ref, b2_ref, w3_ref, b3_ref, o_ref,
                *, compute_dtype):
    # Fused 3-layer MLP on one (tm, D) tile of rows; f32 accumulation.
    x = x_ref[...].astype(compute_dtype)            # no-op if x already bf16

    h1 = jnp.dot(x, w1_ref[...], preferred_element_type=jnp.float32)
    h1 = jnp.maximum(h1 + b1_ref[...].astype(jnp.float32), 0.0)

    h2 = jnp.dot(h1.astype(compute_dtype), w2_ref[...],
                 preferred_element_type=jnp.float32)
    h2 = jnp.maximum(h2 + b2_ref[...].astype(jnp.float32), 0.0)

    # Final (H2 -> 1): contract on H2 with h2 as the "transposed" operand so
    # the MXU emits a lane-dense (1, tm) row directly (rows on lanes).
    out_row = lax.dot_general(
        w3_ref[...], h2,
        dimension_numbers=(((1,), (1,)), ((), ())),
        preferred_element_type=jnp.float32)          # (1, tm)
    out_row = out_row + b3_ref[0, 0]                 # scalar bias from SMEM
    o_ref[...] = out_row.reshape(1, 1, -1).astype(o_ref.dtype)


@functools.partial(jax.jit, static_argnames=("embedding_dim", "compute_dtype"))
def dense_network(x, params, *, embedding_dim, compute_dtype=jnp.bfloat16):
    """Pallas implementation of DenseNetwork.forward.

    x: any shape whose total size is divisible by embedding_dim
       (torch does x.reshape((-1, embedding_dim))).
    Returns: (M, 1) float32 where M = x.size // embedding_dim.
    """
    w1, b1, w2, b2, w3, b3 = params
    D = embedding_dim
    H1, H2 = D // 4, D // 16

    x2 = x.reshape(-1, D)
    M = x2.shape[0]
    x_isz = x2.dtype.itemsize
    w_isz = jnp.dtype(compute_dtype).itemsize

    vmem_cap = _tpu_vmem_capacity()
    tm = _pick_row_tile(M, D, H1, H2, x_isz, w_isz, int(vmem_cap * 0.8))
    num_tiles = pl.cdiv(M, tm)
    est = _vmem_estimate(tm, D, H1, H2, x_isz, w_isz)
    vmem_limit = int(min(vmem_cap * 0.9, max(32 << 20, 2 * est)))

    # Resident operands (tiny): weights in compute dtype so both MXU operands
    # are bf16; w3 as a (1, H2) f32 row; b3 as a (1, 1) f32 SMEM scalar.
    w1c = w1.astype(compute_dtype)
    w2c = w2.astype(compute_dtype)
    b1r = b1.reshape(1, H1)
    b2r = b2.reshape(1, H2)
    w3_row = w3.reshape(1, H2).astype(jnp.float32)
    b3_s = b3.reshape(1, 1).astype(jnp.float32)

    x_spec_kwargs = {}
    if num_tiles >= 3:
        # Deepen only the x stream's pipeline; weights stay constant-index
        # resident.  Skipped for very short grids.
        x_spec_kwargs["pipeline_mode"] = pl.Buffered(3)
    x_spec = pl.BlockSpec((tm, D), lambda i: (i, 0), **x_spec_kwargs)
    resident = lambda shape: pl.BlockSpec(shape, lambda i: (0, 0))

    out = pl.pallas_call(
        functools.partial(_mlp_kernel, compute_dtype=compute_dtype),
        out_shape=jax.ShapeDtypeStruct((num_tiles, 1, tm), jnp.float32),
        grid=(num_tiles,),
        in_specs=[
            x_spec,                                   # streamed x row tiles
            resident((D, H1)), resident((1, H1)),     # layer 1 (resident)
            resident((H1, H2)), resident((1, H2)),    # layer 2 (resident)
            resident((1, H2)),                        # layer 3 weight row
            pl.BlockSpec(memory_space=pltpu.MemorySpace.SMEM),  # b3 scalar
        ],
        out_specs=pl.BlockSpec((1, 1, tm), lambda i: (i, 0, 0)),
        compiler_params=pltpu.CompilerParams(
            dimension_semantics=("parallel",),
            vmem_limit_bytes=vmem_limit,
        ),
    )(x2, w1c, b1r, w2c, b2r, w3_row, b3_s)

    # (num_tiles, 1, tm) -> (num_tiles*tm, 1); drop the partial-block tail.
    return out.reshape(num_tiles * tm, 1)[:M]


def init_params(key, embedding_dim, dtype=jnp.bfloat16):
    """Deterministic init mirroring torch.nn.Linear (uniform +/- 1/sqrt(fan_in)).

    Weights are stored as (in_features, out_features), i.e. W_torch.T.
    """
    D = embedding_dim
    dims = [(D, D // 4), (D // 4, D // 16), (D // 16, 1)]
    params = []
    for fan_in, fan_out in dims:
        key, kw, kb = jax.random.split(key, 3)
        bound = 1.0 / (fan_in ** 0.5)
        w = jax.random.uniform(kw, (fan_in, fan_out), jnp.float32, -bound, bound)
        b = jax.random.uniform(kb, (1, fan_out), jnp.float32, -bound, bound)
        params += [w.astype(dtype), b.astype(dtype)]
    return tuple(params)


def _reference(x, params, embedding_dim, compute_dtype):
    """Pure-JAX reference mirroring the kernel's casts / f32 accumulation."""
    w1, b1, w2, b2, w3, b3 = params
    cd = compute_dtype
    h = x.reshape(-1, embedding_dim)
    h1 = jnp.dot(h.astype(cd), w1.astype(cd), preferred_element_type=jnp.float32)
    h1 = jnp.maximum(h1 + b1.reshape(1, -1).astype(jnp.float32), 0.0)
    h2 = jnp.dot(h1.astype(cd), w2.astype(cd), preferred_element_type=jnp.float32)
    h2 = jnp.maximum(h2 + b2.reshape(1, -1).astype(jnp.float32), 0.0)
    out = jnp.dot(h2, w3.reshape(-1, 1).astype(jnp.float32),
                  preferred_element_type=jnp.float32)
    return out + b3.reshape(()).astype(jnp.float32)


if __name__ == "__main__":
    embedding_dim = 64            # D//4 = 16, D//16 = 4
    key = jax.random.PRNGKey(0)
    kx, kx2, kp = jax.random.split(key, 3)

    params = init_params(kp, embedding_dim, dtype=jnp.bfloat16)

    # Case 1: M = 2*8 = 16 rows (divides the row tile).
    x = jax.random.normal(kx, (2, 8, embedding_dim), jnp.float32).astype(jnp.bfloat16)
    out = jax.block_until_ready(dense_network(x, params, embedding_dim=embedding_dim))
    ref = _reference(x, params, embedding_dim, jnp.bfloat16)
    assert out.shape == (16, 1), out.shape
    assert jnp.allclose(out, ref, atol=2e-3, rtol=2e-3), "mismatch vs JAX reference"

    # Case 2: M = 3*6 = 18 rows -> non-divisible grid (partial boundary block,
    # no wrapper-side padding).
    xr = jax.random.normal(kx2, (3, 6, embedding_dim), jnp.float32).astype(jnp.bfloat16)
    outr = jax.block_until_ready(dense_network(xr, params, embedding_dim=embedding_dim))
    refr = _reference(xr, params, embedding_dim, jnp.bfloat16)
    assert outr.shape == (18, 1), outr.shape
    assert jnp.allclose(outr, refr, atol=2e-3, rtol=2e-3), "mismatch vs JAX reference (ragged)"

    print("KERNEL_OK")
</pallas_src>

<mosaic_0001>
module attributes {stable_mosaic.version = 11 : i64} {
  func.func @_mlp_kernel(%arg0: i32, %arg1: memref<16x64xbf16, #tpu.memory_space<vmem>>, %arg2: memref<64x16xbf16, #tpu.memory_space<vmem>>, %arg3: memref<1x16xbf16, #tpu.memory_space<vmem>>, %arg4: memref<16x4xbf16, #tpu.memory_space<vmem>>, %arg5: memref<1x4xbf16, #tpu.memory_space<vmem>>, %arg6: memref<1x4xf32, #tpu.memory_space<vmem>>, %arg7: memref<1x1xf32, #tpu.memory_space<smem>>, %arg8: memref<1x1x16xf32, #tpu.memory_space<vmem>>) attributes {dimension_semantics = [#tpu.dimension_semantics<parallel>], iteration_bounds = array<i64: 1>, scalar_prefetch = 0 : i64, scratch_operands = 0 : i64, tpu.core_type = #tpu.core_type<tc>, window_params = [{transform_indices = @transform_0, window_bounds = array<i64: 16, 64>}, {pipeline_mode = #tpu.pipeline_mode<synchronous>, transform_indices = @transform_1, window_bounds = array<i64: 64, 16>}, {pipeline_mode = #tpu.pipeline_mode<synchronous>, transform_indices = @transform_2, window_bounds = array<i64: 1, 16>}, {pipeline_mode = #tpu.pipeline_mode<synchronous>, transform_indices = @transform_3, window_bounds = array<i64: 16, 4>}, {pipeline_mode = #tpu.pipeline_mode<synchronous>, transform_indices = @transform_4, window_bounds = array<i64: 1, 4>}, {pipeline_mode = #tpu.pipeline_mode<synchronous>, transform_indices = @transform_5, window_bounds = array<i64: 1, 4>}, {transform_indices = @transform_6, window_bounds = array<i64: 1, 1>}, {transform_indices = @transform_7, window_bounds = array<i64: 1, 1, 16>}]} {
    %c0 = arith.constant 0 : index
    %c0_0 = arith.constant 0 : index
    %0 = vector.load %arg1[%c0, %c0_0] : memref<16x64xbf16, #tpu.memory_space<vmem>>, vector<16x64xbf16>
    %c0_1 = arith.constant 0 : index
    %c0_2 = arith.constant 0 : index
    %1 = vector.load %arg2[%c0_1, %c0_2] : memref<64x16xbf16, #tpu.memory_space<vmem>>, vector<64x16xbf16>
    %cst = arith.constant dense<0.000000e+00> : vector<16x16xf32>
    %2 = tpu.matmul %0, %1, %cst {dimension_numbers = #tpu.dot_dimension_numbers<[1], [0], [0], [1], [0, 0, 1, 1], [], []>} : vector<16x64xbf16>, vector<64x16xbf16>, vector<16x16xf32> -> vector<16x16xf32>
    %c0_3 = arith.constant 0 : index
    %c0_4 = arith.constant 0 : index
    %3 = vector.load %arg3[%c0_3, %c0_4] : memref<1x16xbf16, #tpu.memory_space<vmem>>, vector<1x16xbf16>
    %4 = arith.extf %3 : vector<1x16xbf16> to vector<1x16xf32>
    %5 = vector.broadcast %4 : vector<1x16xf32> to vector<16x16xf32>
    %6 = arith.addf %2, %5 : vector<16x16xf32>
    %cst_5 = arith.constant 0.000000e+00 : f32
    %7 = vector.broadcast %cst_5 : f32 to vector<16x16xf32>
    %8 = arith.maximumf %6, %7 : vector<16x16xf32>
    %9 = arith.truncf %8 : vector<16x16xf32> to vector<16x16xbf16>
    %c0_6 = arith.constant 0 : index
    %c0_7 = arith.constant 0 : index
    %10 = vector.load %arg4[%c0_6, %c0_7] : memref<16x4xbf16, #tpu.memory_space<vmem>>, vector<16x4xbf16>
    %cst_8 = arith.constant dense<0.000000e+00> : vector<16x4xf32>
    %11 = tpu.matmul %9, %10, %cst_8 {dimension_numbers = #tpu.dot_dimension_numbers<[1], [0], [0], [1], [0, 0, 1, 1], [], []>} : vector<16x16xbf16>, vector<16x4xbf16>, vector<16x4xf32> -> vector<16x4xf32>
    %c0_9 = arith.constant 0 : index
    %c0_10 = arith.constant 0 : index
    %12 = vector.load %arg5[%c0_9, %c0_10] : memref<1x4xbf16, #tpu.memory_space<vmem>>, vector<1x4xbf16>
    %13 = arith.extf %12 : vector<1x4xbf16> to vector<1x4xf32>
    %14 = vector.broadcast %13 : vector<1x4xf32> to vector<16x4xf32>
    %15 = arith.addf %11, %14 : vector<16x4xf32>
    %cst_11 = arith.constant 0.000000e+00 : f32
    %16 = vector.broadcast %cst_11 : f32 to vector<16x4xf32>
    %17 = arith.maximumf %15, %16 : vector<16x4xf32>
    %c0_12 = arith.constant 0 : index
    %c0_13 = arith.constant 0 : index
    %18 = vector.load %arg6[%c0_12, %c0_13] : memref<1x4xf32, #tpu.memory_space<vmem>>, vector<1x4xf32>
    %cst_14 = arith.constant dense<0.000000e+00> : vector<1x16xf32>
    %19 = tpu.matmul %18, %17, %cst_14 {dimension_numbers = #tpu.dot_dimension_numbers<[1], [1], [0], [0], [0, 0, 1, 0], [], []>} : vector<1x4xf32>, vector<16x4xf32>, vector<1x16xf32> -> vector<1x16xf32>
    %c0_15 = arith.constant 0 : index
    %c0_16 = arith.constant 0 : index
    %20 = memref.load %arg7[%c0_15, %c0_16] : memref<1x1xf32, #tpu.memory_space<smem>>
    %21 = vector.broadcast %20 : f32 to vector<1x16xf32>
    %22 = arith.addf %19, %21 : vector<1x16xf32>
    %23 = vector.shape_cast %22 : vector<1x16xf32> to vector<1x1x16xf32>
    %c0_17 = arith.constant 0 : index
    %c0_18 = arith.constant 0 : index
    %c0_19 = arith.constant 0 : index
    %24 = vector.load %arg8[%c0_17, %c0_18, %c0_19] : memref<1x1x16xf32, #tpu.memory_space<vmem>>, vector<1x1x16xf32>
    tpu.vector_store %arg8[%c0_17, %c0_18, %c0_19], %23 {strides = array<i32>} : memref<1x1x16xf32, #tpu.memory_space<vmem>>, vector<1x1x16xf32>,
    return
  }
  func.func @transform_0(%arg0: i32) -> (i32, i32) {
    %c0_i32 = arith.constant 0 : i32
    %c0_i32_0 = arith.constant 0 : i32
    return %arg0, %c0_i32 : i32, i32
  }
  func.func @transform_1(%arg0: i32) -> (i32, i32) {
    %c0_i32 = arith.constant 0 : i32
    %c0_i32_0 = arith.constant 0 : i32
    %c0_i32_1 = arith.constant 0 : i32
    return %c0_i32, %c0_i32_0 : i32, i32
  }
  func.func @transform_2(%arg0: i32) -> (i32, i32) {
    %c0_i32 = arith.constant 0 : i32
    %c0_i32_0 = arith.constant 0 : i32
    %c0_i32_1 = arith.constant 0 : i32
    return %c0_i32, %c0_i32_0 : i32, i32
  }
  func.func @transform_3(%arg0: i32) -> (i32, i32) {
    %c0_i32 = arith.constant 0 : i32
    %c0_i32_0 = arith.constant 0 : i32
    %c0_i32_1 = arith.constant 0 : i32
    return %c0_i32, %c0_i32_0 : i32, i32
  }
  func.func @transform_4(%arg0: i32) -> (i32, i32) {
    %c0_i32 = arith.constant 0 : i32
    %c0_i32_0 = arith.constant 0 : i32
    %c0_i32_1 = arith.constant 0 : i32
    return %c0_i32, %c0_i32_0 : i32, i32
  }
  func.func @transform_5(%arg0: i32) -> (i32, i32) {
    %c0_i32 = arith.constant 0 : i32
    %c0_i32_0 = arith.constant 0 : i32
    %c0_i32_1 = arith.constant 0 : i32
    return %c0_i32, %c0_i32_0 : i32, i32
  }
  func.func @transform_6(%arg0: i32) -> (i32, i32) {
    %c0_i32 = arith.constant 0 : i32
    %c0_i32_0 = arith.constant 0 : i32
    %c0_i32_1 = arith.constant 0 : i32
    return %c0_i32, %c0_i32_0 : i32, i32
  }
  func.func @transform_7(%arg0: i32) -> (i32, i32, i32) {
    %c0_i32 = arith.constant 0 : i32
    %c0_i32_0 = arith.constant 0 : i32
    %c0_i32_1 = arith.constant 0 : i32
    return %arg0, %c0_i32, %c0_i32_0 : i32, i32, i32
  }
}

</mosaic_0001>

<bundles_post_ra>
// kernel: dense_network.1
= control target key start
LH: loop header
LB: loop body
LE: loop exit
PB: predicated region body
PF: predicated region fallthrough
CT: control target
= control target key end

     0   :  { %s310_s0 = inlined_call_operand.vmem [shape: bf16[16,64], index: 0, kind: input, shape index: {}]   ;;  %s311_s1 = inlined_call_operand.vmem [shape: bf16[64,16], index: 1, kind: input, shape index: {}]   ;;  %s312_s2 = inlined_call_operand.vmem [shape: bf16[1,16], index: 2, kind: input, shape index: {}]   ;;  %s313_s3 = inlined_call_operand.vmem [shape: bf16[16,4], index: 3, kind: input, shape index: {}]   ;;  %s314_s4 = inlined_call_operand.vmem [shape: bf16[1,4], index: 4, kind: input, shape index: {}]   ;;  %s315_s5 = inlined_call_operand.vmem [shape: f32[1,4], index: 5, kind: input, shape index: {}]   ;;  %s316_s6 = inlined_call_operand.<no memory space> [shape: f32[1,1], index: 6, kind: input, shape index: {}]   ;;  %s317_s7 = inlined_call_operand.hbm [shape: f32[1,1,16], index: 7, kind: output, shape index: {}]  }
   0x1   :  { %v207_v0 = vld [vmem:[%s311_s1 + $0x18] sm:$0xff]  ;;  %v206_v1 = vld [vmem:[%s311_s1 + $0x10] sm:$0xff] }
   0x2   :  { %79 = vmatpush.bf16.msra.mxu0 %v207_v0 }
   0x3   :  { %13 = vsyncpa [#allocation4], 0  ;;  %v205_v2 = vld [vmem:[%s311_s1 + $0x8] sm:$0xff]  ;;  %v204_v3 = vld [vmem:[%s311_s1] sm:$0xff]  ;;  %vm71_vm0 = vcmask 523264   ;;  %vm103_vm1 = vcmask 130048   ;;  %v125_v26 = vstv %s316_s6 }
   0x4   :  { %v203_v4 = vld [vmem:[%s310_s0] sm:$0xff]  ;;  %vm126_vm2 = vcmask 31744   ;;  %s165_s20 = sshll.u32 %s317_s7, 4  ;;  %vm156_vm3 = vcmask 122880   ;;  %s166_s20 = int_to_ptr.hbm [resolvable:$true] %s165_s20 }
   0x5   :  { %v208_v5 = vld [vmem:[%s313_s3] sm:$0xff] }
   0x6   :  { %80 = vmatpush.bf16.msra.mxu0 %v206_v1  ;;  %114 = vmatpush.bf16.msra.mxu1 %v208_v5  ;;  %v39_v6 = vld [vmem:[%s312_s2] sm:$0x1] }
   0x7   :  { %v40_v7 = vunpack.c.l.bf16 %v39_v6  ;;  %v94_v16 = vld [vmem:[%s314_s4] sm:$0x1]  ;;  %s236_s4 = smov [#allocation3]  }
   0x8   :  { %v95_v18 = vunpack.c.l.bf16 %v94_v16  ;;  %v123_v25 = vld [vmem:[%s315_s5] sm:$0x1]  ;;  %s163_s17 = sshll.u32 %s236_s4, 4  ;;  %s164_s17 = int_to_ptr.vmem [resolvable:$true] %s163_s17 }
   0x9   :  { %v41_v9 = vperm.slane %v40_v7, 0 }
   0xa   :  { %81 = vmatpush.bf16.msra.mxu0 %v205_v2  ;;  %v96_v19 = vperm.slane %v95_v18, 0 }
   0xe   :  { %82 = vmatpush.bf16.msra.mxu0 %v204_v3 }
  0x11   :  { %194 = vmatmul.msk.bf16.vlgmr.msra.gmra.mxu0 %vm71_vm0, %v203_v4 }
  0x8e   :  { %v84_v8 = vpop.f32.mrf.mxu0 }
  0x8f   :  { %v85_v10 = vadd.f32 %v84_v8, %v41_v9 }
  0x91   :  { %v89_v13 = vmax.f32 %v85_v10, 0.0 }
  0x96   :  { %v86_v11 = vpop.f32.mrf.mxu0 }
  0x97   :  { %v87_v12 = vadd.f32 %v86_v11, %v41_v9 }
  0x99   :  { %v90_v14 = vmax.f32 %v87_v12, 0.0 }
  0x9b   :  { %v91_v15 = vpack.c.bf16 %v90_v14, %v89_v13 }
  0x9d   :  { %199 = vmatmul.msk.bf16.vlgmr.msra.gmra.mxu1 %vm103_vm1, %v91_v15 }
 0x11a   :  { %v116_v17 = vpop.f32.mrf.mxu1 }
 0x11b   :  { %v117_v22 = vadd.f32 %v116_v17, %v96_v19 }
 0x11d   :  { %v121_v24 = vmax.f32 %v117_v22, 0.0 }
 0x122   :  { %v118_v20 = vpop.f32.mrf.mxu1 }
 0x123   :  { %v119_v21 = vadd.f32 %v118_v20, %v96_v19 }
 0x125   :  { %v122_v23 = vmax.f32 %v119_v21, 0.0 }
 0x127   :  { %200 = vmatpush.xpose.msk.msra.mxu2 %vm126_vm2, %v122_v23 }
 0x12b   :  { %201 = vmatpush.xpose.msk.msra.mxu2 %vm126_vm2, %v121_v24 }
 0x12e   :  { %202 = vmatmul.msk.f32.vlgmr.msra.gmra.mxu2 %vm126_vm2, %v123_v25 }
 0x1b1   :  { %v153_v27 = vpop.f32.mrf.mxu2 }
 0x1b2   :  { %v154_v28 = vadd.f32 %v153_v27, %v125_v26 }
 0x1b4   :  { %157 = vst.msk [vmem:[#allocation3] sm:$0x1] %vm156_vm3, %v154_v28 }
 0x1b5   :  { %168 = dma.vmem_to_hbm [thread:$0]  %s164_s17, 16, %s166_s20, [#allocation4]  }
 0x1b6   :  { %234 = dma.done.wait [#allocation4], 16  }
 0x1b7   :  { %235 = vsyncadd [#allocation4], 4294967280 }
 0x1b8   :  { %173 = vsyncpa [#allocation4], 1 }

</bundles_post_ra>
